<compile_context>
chip_gen: v7x
topology: tpu7x:2x2x1
jax: 0.10.0
libtpu: 0.0.40
codegen_flags: <defaults>
</compile_context>

<pallas_src>
import functools

import jax
import jax.numpy as jnp
from jax import lax
from jax.experimental import pallas as pl
from jax.experimental.pallas import tpu as pltpu

MIN_NORM = 1e-15
LN_EPS = 1e-5


def _artanh(x):
    x = jnp.clip(x, -1.0 + 1e-7, 1.0 - 1e-7)
    return 0.5 * jnp.log((1.0 + x) / (1.0 - x))


def _expmap0(u, c):
    """Poincare-ball exp map at the origin (used only to build valid inputs)."""
    sqrt_c = c ** 0.5
    n = jnp.maximum(jnp.sqrt(jnp.sum(u * u, axis=-1, keepdims=True)), MIN_NORM)
    return jnp.tanh(sqrt_c * n) * u / (sqrt_c * n)


# ------------------------------- Pallas kernel -------------------------------
def hypnorm_kernel(x_ref, gamma_ref, beta_ref, o_ref, *, c, eps):
    x = x_ref[...].astype(jnp.float32)                                  # (TQ, D)
    sqrt_c = c ** 0.5

    # ---- manifold.logmap0 (Poincare ball) ----
    xn = jnp.maximum(jnp.sqrt(jnp.sum(x * x, axis=-1, keepdims=True)), MIN_NORM)
    scn = sqrt_c * xn
    u = x * (_artanh(scn) / scn)

    # ---- LayerNorm over the feature axis ----
    mean = jnp.mean(u, axis=-1, keepdims=True)
    d = u - mean
    var = jnp.mean(d * d, axis=-1, keepdims=True)
    y = d * lax.rsqrt(var + eps) * gamma_ref[...] + beta_ref[...]       # (TQ, D)

    # ---- manifold.expmap0 (Poincare ball) ----
    yn = jnp.maximum(jnp.sqrt(jnp.sum(y * y, axis=-1, keepdims=True)), MIN_NORM)
    scy = sqrt_c * yn
    out = y * (jnp.tanh(scy) / scy)

    o_ref[...] = out.astype(o_ref.dtype)


# ------------------------------- Layer wrapper -------------------------------
def hypnorm_forward(x, gamma, beta, c=1.0, eps=LN_EPS, row_tile=512):
    """HypNorm forward: expmap0(LayerNorm(logmap0(x)))."""
    orig_shape = x.shape
    d = orig_shape[-1]
    rows = 1
    for s in orig_shape[:-1]:
        rows *= s

    x2 = x.reshape(rows, d).astype(jnp.float32)
    g2 = gamma.reshape(1, d).astype(jnp.float32)
    b2 = beta.reshape(1, d).astype(jnp.float32)

    # Small problems: one fused invocation (no per-grid-step overhead).
    # Large problems: tile rows in multiples of 8 sublanes; reductions are
    # per-row so padded tail rows are safely masked on the write side.
    tq = rows if rows <= row_tile else row_tile
    grid = (pl.cdiv(rows, tq),)

    kernel = functools.partial(hypnorm_kernel, c=float(c), eps=float(eps))
    out = pl.pallas_call(
        kernel,
        out_shape=jax.ShapeDtypeStruct((rows, d), jnp.float32),
        grid=grid,
        in_specs=[
            pl.BlockSpec((tq, d), lambda i: (i, 0)),   # x rows
            pl.BlockSpec((1, d), lambda i: (0, 0)),    # LayerNorm gamma
            pl.BlockSpec((1, d), lambda i: (0, 0)),    # LayerNorm beta
        ],
        out_specs=pl.BlockSpec((tq, d), lambda i: (i, 0)),
        compiler_params=pltpu.CompilerParams(dimension_semantics=("parallel",)),
    )(x2, g2, b2)
    return out.reshape(orig_shape)


# ------------------------ Pure-JAX reference (torch-style) -------------------
def reference_forward(x, gamma, beta, c=1.0, eps=LN_EPS):
    sqrt_c = c ** 0.5
    xn = jnp.maximum(jnp.sqrt(jnp.sum(x * x, axis=-1, keepdims=True)), MIN_NORM)
    u = x / (sqrt_c * xn) * _artanh(sqrt_c * xn)                # logmap0
    mean = jnp.mean(u, axis=-1, keepdims=True)                  # LayerNorm
    var = jnp.mean((u - mean) ** 2, axis=-1, keepdims=True)
    y = (u - mean) / jnp.sqrt(var + eps) * gamma + beta
    yn = jnp.maximum(jnp.sqrt(jnp.sum(y * y, axis=-1, keepdims=True)), MIN_NORM)
    return jnp.tanh(sqrt_c * yn) * y / (sqrt_c * yn)            # expmap0


# ----------------------------------- Main ------------------------------------
if __name__ == "__main__":
    B, N, D = 2, 8, 32   # batch=2, seq=8, hidden=32 (in_features = 32)

    key = jax.random.PRNGKey(0)
    k = jax.random.split(key, 3)

    # Points on the Poincare ball (valid manifold inputs).
    x_tan = 0.1 * jax.random.normal(k[0], (B, N, D), dtype=jnp.float32)
    x = _expmap0(x_tan, 1.0)

    # LayerNorm parameters (module init is ones/zeros; perturb to exercise the
    # affine path — forward semantics are identical for any parameter values).
    gamma = 1.0 + 0.1 * jax.random.normal(k[1], (D,), dtype=jnp.float32)
    beta = 0.1 * jax.random.normal(k[2], (D,), dtype=jnp.float32)

    out = hypnorm_forward(x, gamma, beta)
    jax.block_until_ready(out)

    ref = reference_forward(x, gamma, beta)
    assert out.shape == (B, N, D)
    assert jnp.allclose(out, ref, atol=1e-4, rtol=1e-4), "kernel/reference mismatch"

    print("KERNEL_OK")
</pallas_src>

<mosaic_0001>
module attributes {stable_mosaic.version = 11 : i64} {
  func.func @hypnorm_kernel(%arg0: i32, %arg1: memref<16x32xf32, #tpu.memory_space<vmem>>, %arg2: memref<1x32xf32, #tpu.memory_space<vmem>>, %arg3: memref<1x32xf32, #tpu.memory_space<vmem>>, %arg4: memref<16x32xf32, #tpu.memory_space<vmem>>) attributes {dimension_semantics = [#tpu.dimension_semantics<parallel>], iteration_bounds = array<i64: 1>, scalar_prefetch = 0 : i64, scratch_operands = 0 : i64, tpu.core_type = #tpu.core_type<tc>, window_params = [{transform_indices = @transform_0, window_bounds = array<i64: 16, 32>}, {pipeline_mode = #tpu.pipeline_mode<synchronous>, transform_indices = @transform_1, window_bounds = array<i64: 1, 32>}, {pipeline_mode = #tpu.pipeline_mode<synchronous>, transform_indices = @transform_2, window_bounds = array<i64: 1, 32>}, {transform_indices = @transform_3, window_bounds = array<i64: 16, 32>}]} {
    %c0 = arith.constant 0 : index
    %c0_0 = arith.constant 0 : index
    %0 = vector.load %arg1[%c0, %c0_0] : memref<16x32xf32, #tpu.memory_space<vmem>>, vector<16x32xf32>
    %1 = arith.mulf %0, %0 : vector<16x32xf32>
    %cst = arith.constant dense<0.000000e+00> : vector<16xf32>
    %2 = vector.multi_reduction <add>, %1, %cst [1] : vector<16x32xf32> to vector<16xf32>
    %3 = vector.shape_cast %2 : vector<16xf32> to vector<16x1xf32>
    %4 = math.sqrt %3 : vector<16x1xf32>
    %cst_1 = arith.constant 1.000000e-15 : f32
    %5 = vector.broadcast %cst_1 : f32 to vector<16x1xf32>
    %6 = arith.maximumf %4, %5 : vector<16x1xf32>
    %cst_2 = arith.constant 1.000000e+00 : f32
    %7 = vector.broadcast %cst_2 : f32 to vector<16x1xf32>
    %8 = arith.mulf %7, %6 : vector<16x1xf32>
    %cst_3 = arith.constant -0.99999988 : f32
    %cst_4 = arith.constant 0.99999988 : f32
    %9 = vector.broadcast %cst_3 : f32 to vector<16x1xf32>
    %10 = arith.maximumf %9, %8 : vector<16x1xf32>
    %11 = vector.broadcast %cst_4 : f32 to vector<16x1xf32>
    %12 = arith.minimumf %11, %10 : vector<16x1xf32>
    %cst_5 = arith.constant 1.000000e+00 : f32
    %13 = vector.broadcast %cst_5 : f32 to vector<16x1xf32>
    %14 = arith.addf %13, %12 : vector<16x1xf32>
    %cst_6 = arith.constant 1.000000e+00 : f32
    %15 = vector.broadcast %cst_6 : f32 to vector<16x1xf32>
    %16 = arith.subf %15, %12 : vector<16x1xf32>
    %17 = arith.divf %14, %16 : vector<16x1xf32>
    %18 = math.log %17 : vector<16x1xf32>
    %cst_7 = arith.constant 5.000000e-01 : f32
    %19 = vector.broadcast %cst_7 : f32 to vector<16x1xf32>
    %20 = arith.mulf %19, %18 : vector<16x1xf32>
    %21 = arith.divf %20, %8 : vector<16x1xf32>
    %22 = vector.broadcast %21 : vector<16x1xf32> to vector<16x32xf32>
    %23 = arith.mulf %0, %22 : vector<16x32xf32>
    %cst_8 = arith.constant dense<0.000000e+00> : vector<16xf32>
    %24 = vector.multi_reduction <add>, %23, %cst_8 [1] : vector<16x32xf32> to vector<16xf32>
    %25 = vector.shape_cast %24 : vector<16xf32> to vector<16x1xf32>
    %cst_9 = arith.constant 3.200000e+01 : f32
    %26 = vector.broadcast %cst_9 : f32 to vector<16x1xf32>
    %27 = arith.divf %25, %26 : vector<16x1xf32>
    %28 = vector.broadcast %27 : vector<16x1xf32> to vector<16x32xf32>
    %29 = arith.subf %23, %28 : vector<16x32xf32>
    %30 = arith.mulf %29, %29 : vector<16x32xf32>
    %cst_10 = arith.constant dense<0.000000e+00> : vector<16xf32>
    %31 = vector.multi_reduction <add>, %30, %cst_10 [1] : vector<16x32xf32> to vector<16xf32>
    %32 = vector.shape_cast %31 : vector<16xf32> to vector<16x1xf32>
    %cst_11 = arith.constant 3.200000e+01 : f32
    %33 = vector.broadcast %cst_11 : f32 to vector<16x1xf32>
    %34 = arith.divf %32, %33 : vector<16x1xf32>
    %cst_12 = arith.constant 9.99999974E-6 : f32
    %35 = vector.broadcast %cst_12 : f32 to vector<16x1xf32>
    %36 = arith.addf %34, %35 : vector<16x1xf32>
    %37 = math.rsqrt %36 : vector<16x1xf32>
    %38 = vector.broadcast %37 : vector<16x1xf32> to vector<16x32xf32>
    %39 = arith.mulf %29, %38 : vector<16x32xf32>
    %c0_13 = arith.constant 0 : index
    %c0_14 = arith.constant 0 : index
    %40 = vector.load %arg2[%c0_13, %c0_14] : memref<1x32xf32, #tpu.memory_space<vmem>>, vector<1x32xf32>
    %41 = vector.broadcast %40 : vector<1x32xf32> to vector<16x32xf32>
    %42 = arith.mulf %39, %41 : vector<16x32xf32>
    %c0_15 = arith.constant 0 : index
    %c0_16 = arith.constant 0 : index
    %43 = vector.load %arg3[%c0_15, %c0_16] : memref<1x32xf32, #tpu.memory_space<vmem>>, vector<1x32xf32>
    %44 = vector.broadcast %43 : vector<1x32xf32> to vector<16x32xf32>
    %45 = arith.addf %42, %44 : vector<16x32xf32>
    %46 = arith.mulf %45, %45 : vector<16x32xf32>
    %cst_17 = arith.constant dense<0.000000e+00> : vector<16xf32>
    %47 = vector.multi_reduction <add>, %46, %cst_17 [1] : vector<16x32xf32> to vector<16xf32>
    %48 = vector.shape_cast %47 : vector<16xf32> to vector<16x1xf32>
    %49 = math.sqrt %48 : vector<16x1xf32>
    %cst_18 = arith.constant 1.000000e-15 : f32
    %50 = vector.broadcast %cst_18 : f32 to vector<16x1xf32>
    %51 = arith.maximumf %49, %50 : vector<16x1xf32>
    %cst_19 = arith.constant 1.000000e+00 : f32
    %52 = vector.broadcast %cst_19 : f32 to vector<16x1xf32>
    %53 = arith.mulf %52, %51 : vector<16x1xf32>
    %54 = math.tanh %53 : vector<16x1xf32>
    %55 = arith.divf %54, %53 : vector<16x1xf32>
    %56 = vector.broadcast %55 : vector<16x1xf32> to vector<16x32xf32>
    %57 = arith.mulf %45, %56 : vector<16x32xf32>
    %c0_20 = arith.constant 0 : index
    %c0_21 = arith.constant 0 : index
    %58 = vector.load %arg4[%c0_20, %c0_21] : memref<16x32xf32, #tpu.memory_space<vmem>>, vector<16x32xf32>
    tpu.vector_store %arg4[%c0_20, %c0_21], %57 {strides = array<i32>} : memref<16x32xf32, #tpu.memory_space<vmem>>, vector<16x32xf32>,
    return
  }
  func.func @transform_0(%arg0: i32) -> (i32, i32) {
    %c0_i32 = arith.constant 0 : i32
    %c0_i32_0 = arith.constant 0 : i32
    return %arg0, %c0_i32 : i32, i32
  }
  func.func @transform_1(%arg0: i32) -> (i32, i32) {
    %c0_i32 = arith.constant 0 : i32
    %c0_i32_0 = arith.constant 0 : i32
    %c0_i32_1 = arith.constant 0 : i32
    return %c0_i32, %c0_i32_0 : i32, i32
  }
  func.func @transform_2(%arg0: i32) -> (i32, i32) {
    %c0_i32 = arith.constant 0 : i32
    %c0_i32_0 = arith.constant 0 : i32
    %c0_i32_1 = arith.constant 0 : i32
    return %c0_i32, %c0_i32_0 : i32, i32
  }
  func.func @transform_3(%arg0: i32) -> (i32, i32) {
    %c0_i32 = arith.constant 0 : i32
    %c0_i32_0 = arith.constant 0 : i32
    return %arg0, %c0_i32 : i32, i32
  }
}

</mosaic_0001>

<bundles_post_ra>
// kernel: tpu_custom_call.1
= control target key start
LH: loop header
LB: loop body
LE: loop exit
PB: predicated region body
PF: predicated region fallthrough
CT: control target
= control target key end

     0   :  { %8 = vsyncpa [#allocation3], 0  ;;  %s334_s0 = inlined_call_operand.hbm [shape: f32[16,32], index: 0, kind: input, shape index: {}]   ;;  %s335_s1 = inlined_call_operand.vmem [shape: f32[1,32], index: 1, kind: input, shape index: {}]   ;;  %s336_s2 = inlined_call_operand.vmem [shape: f32[1,32], index: 2, kind: input, shape index: {}]   ;;  %s337_s3 = inlined_call_operand.hbm [shape: f32[16,32], index: 3, kind: output, shape index: {}]  }
   0x1   :  { %9 = vsyncpa [#allocation4], 0  ;;  %s264_s12 = smov [#allocation2]   ;;  %s216_s16 = scalar_lea.hbm %s334_s0, 256 }
   0x2   :  { %s15_s13 = sshll.u32 %s264_s12, 4  ;;  %p217_p0 = scmp.ne.s32.totalorder %s334_s0, %s216_s16  ;;  %s16_s13 = int_to_ptr.vmem [resolvable:$true] %s15_s13 }
   0x3   :  { %p220_p1 = scmp.lt.u32.totalorder %s216_s16, %s334_s0 }
   0x5   :  { %p222_p2 = pnand %p220_p1, %p217_p0 }
   0x7   :  { %225 = shalt.err (!%p222_p2)
}
   0x8   :  { %s226_s21 = scalar_lea.vmem %s16_s13, 256  ;;  %p231_p4 = scmp.lt.s32.totalorder %s16_s13, %s16_s13 }
   0x9   :  { %p227_p3 = scmp.ne.s32.totalorder %s16_s13, %s226_s21  ;;  %p232_p5 = scmp.lt.s32.totalorder %s226_s21, %s226_s21 }
   0xb   :  { %p233_p6 = por %p232_p5, %p231_p4 }
   0xd   :  { %p234_p7 = pnand %p233_p6, %p227_p3 }
   0xf   :  { %237 = shalt.err (!%p234_p7)
}
  0x10   :  { %s265_s22 = smov 128   ;;  %s266_s23 = smov 8  }
  0x11   :  { %21 = dma.hbm_to_vmem [thread:$0]  %s334_s0, 256, %s16_s13, [#allocation3], %s265_s22, %s265_s22, %s266_s23  }
  0x12   :  { %260 = dma.done.wait [#allocation3], 256  }
  0x13   :  { %261 = vsyncadd [#allocation3], 4294967040  ;;  %v29_v0 = vld [vmem:[#allocation2] sm:$0xff]  ;;  %vm33_vm0 = vcmask 261120   ;;  %v30_v1 = vld [vmem:[#allocation2 + $0x8] sm:$0xff] }
  0x14   :  { %v31_v2 = vmul.f32 %v29_v0, %v29_v0  ;;  %v32_v3 = vmul.f32 %v30_v1, %v30_v1  ;;  %v178_v61 = vld [vmem:[%s335_s1] ss:$0 sm:$0xff]  ;;  %s267_s1 = smov [#allocation5]  }
  0x15   :  { %v179_v63 = vld [vmem:[%s336_s2] ss:$0 sm:$0xff]  ;;  %s164_s2 = sshll.u32 %s267_s1, 4  ;;  %s165_s2 = int_to_ptr.vmem [resolvable:$true] %s164_s2 }
  0x16   :  { %v34_v4 = vsel %vm33_vm0, %v31_v2, 0.0  ;;  %v37_v5 = vsel %vm33_vm0, %v32_v3, 0.0  ;;  %s238_s29 = scalar_lea.vmem %s165_s2, 256  ;;  %p243_p9 = scmp.lt.s32.totalorder %s165_s2, %s165_s2 }
  0x17   :  { %35 = vadd.xlane.f32.xlu0 %v34_v4  ;;  %p239_p8 = scmp.ne.s32.totalorder %s165_s2, %s238_s29  ;;  %p244_p10 = scmp.lt.s32.totalorder %s238_s29, %s238_s29 }
  0x19   :  { %p245_p11 = por %p244_p10, %p243_p9 }
  0x1b   :  { %38 = vadd.xlane.f32.xlu0 %v37_v5  ;;  %p246_p12 = pnand %p245_p11, %p239_p8 }
  0xa4   :  { %v36_v6 = vpop.xlane.xlu0 %35 }
  0xa5   :  { %184 = vrsqrt.f32 %v36_v6  ;;  %vm42_vm1 = vcmp.eq.f32.partialorder %v36_v6, inf  ;;  %v45_v10 = vand.u32 2147483648, %v36_v6  ;;  %vm44_vm2 = vcmp.eq.f32.partialorder %v36_v6, 0.0 }
  0xa8   :  { %v39_v7 = vpop.xlane.xlu0 %38 }
  0xa9   :  { %186 = vrsqrt.f32 %v39_v7  ;;  %vm49_vm3 = vcmp.eq.f32.partialorder %v39_v7, inf  ;;  %v52_v16 = vand.u32 2147483648, %v39_v7  ;;  %vm51_vm4 = vcmp.eq.f32.partialorder %v39_v7, 0.0 }
  0xaf   :  { %v185_v8 = vpop.eup %184 }
  0xb0   :  { %v41_v9 = vmul.f32 %v185_v8, %v36_v6 }
  0xb2   :  { %v43_v11 = vsel %vm42_vm1, %v36_v6, %v41_v9 }
  0xb3   :  { %v187_v12 = vpop.eup %186  ;;  %v46_v13 = vsel %vm44_vm2, %v45_v10, %v43_v11 }
  0xb4   :  { %v54_v14 = vmax.f32 %v46_v13, 1e-15  ;;  %v48_v15 = vmul.f32 %v187_v12, %v39_v7 }
  0xb6   :  { %v50_v17 = vsel %vm49_vm3, %v39_v7, %v48_v15  ;;  %v176_v18 = vclamps-f32 %v54_v14, 0.9999999 }
  0xb7   :  { %v53_v19 = vsel %vm51_vm4, %v52_v16, %v50_v17 }
  0xb8   :  { %v55_v20 = vmax.f32 %v53_v19, 1e-15  ;;  %v62_v21 = vsub.f32 1.0, %v176_v18  ;;  %v60_v24 = vadd.f32 1.0, %v176_v18 }
  0xba   :  { %188 = vrcp.f32 %v62_v21  ;;  %v177_v22 = vclamps-f32 %v55_v20, 0.9999999 }
  0xbc   :  { %v63_v23 = vsub.f32 1.0, %v177_v22  ;;  %v61_v27 = vadd.f32 1.0, %v177_v22 }
  0xbe   :  { %190 = vrcp.f32 %v63_v23 }
  0xc4   :  { %v189_v25 = vpop.eup %188 }
  0xc5   :  { %v65_v26 = vmul.f32 %v189_v25, %v60_v24 }
  0xc7   :  { %192 = vlog2.f32 %v65_v26 }
  0xc8   :  { %v191_v28 = vpop.eup %190  ;;  %194 = vrcp.f32 %v54_v14 }
  0xc9   :  { %v67_v29 = vmul.f32 %v191_v28, %v61_v27 }
  0xcb   :  { %196 = vlog2.f32 %v67_v29 }
  0xcc   :  { %198 = vrcp.f32 %v55_v20 }
  0xd1   :  { %v193_v30 = vpop.eup %192 }
  0xd2   :  { %v69_v31 = vmul.f32 0.6931472, %v193_v30  ;;  %v195_v32 = vpop.eup %194 }
  0xd4   :  { %v72_v33 = vmul.f32 0.5, %v69_v31 }
  0xd5   :  { %v197_v34 = vpop.eup %196 }
  0xd6   :  { %v75_v35 = vmul.f32 %v195_v32, %v72_v33  ;;  %v71_v36 = vmul.f32 0.6931472, %v197_v34  ;;  %v199_v39 = vpop.eup %198 }
  0xd8   :  { %v78_v37 = vmul.f32 %v75_v35, %v29_v0  ;;  %v73_v38 = vmul.f32 0.5, %v71_v36 }
  0xda   :  { %v80_v40 = vsel %vm33_vm0, %v78_v37, 0.0  ;;  %v77_v41 = vmul.f32 %v199_v39, %v73_v38 }
  0xdb   :  { %81 = vadd.xlane.f32.xlu1 %v80_v40 }
  0xdc   :  { %v79_v42 = vmul.f32 %v77_v41, %v30_v1 }
  0xde   :  { %v83_v43 = vsel %vm33_vm0, %v79_v42, 0.0 }
  0xdf   :  { %84 = vadd.xlane.f32.xlu1 %v83_v43 }
 0x168   :  { %v82_v44 = vpop.xlane.xlu1 %81 }
 0x169   :  { %v87_v45 = vmul.f32 0.03125, %v82_v44 }
 0x16b   :  { %v89_v46 = vsub.f32 %v78_v37, %v87_v45 }
 0x16c   :  { %v85_v47 = vpop.xlane.xlu1 %84 }
 0x16d   :  { %v88_v48 = vmul.f32 0.03125, %v85_v47  ;;  %v91_v49 = vmul.f32 %v89_v46, %v89_v46 }
 0x16f   :  { %v90_v50 = vsub.f32 %v79_v42, %v88_v48  ;;  %v93_v51 = vsel %vm33_vm0, %v91_v49, 0.0 }
 0x170   :  { %94 = vadd.xlane.f32.xlu0 %v93_v51 }
 0x171   :  { %v92_v52 = vmul.f32 %v90_v50, %v90_v50 }
 0x173   :  { %v96_v53 = vsel %vm33_vm0, %v92_v52, 0.0 }
 0x174   :  { %97 = vadd.xlane.f32.xlu1 %v96_v53 }
 0x1fd   :  { %v95_v54 = vpop.xlane.xlu0 %94 }
 0x1fe   :  { %v99_v55 = vmul.f32 0.03125, %v95_v54 }
 0x200   :  { %v101_v56 = vadd.f32 1e-05, %v99_v55 }
 0x201   :  { %v98_v57 = vpop.xlane.xlu1 %97 }
 0x202   :  { %200 = vrsqrt.f32 %v101_v56  ;;  %v100_v58 = vmul.f32 0.03125, %v98_v57 }
 0x204   :  { %v102_v59 = vadd.f32 1e-05, %v100_v58 }
 0x206   :  { %202 = vrsqrt.f32 %v102_v59 }
 0x20c   :  { %v201_v60 = vpop.eup %200 }
 0x20d   :  { %v105_v62 = vmul.f32 %v201_v60, %v89_v46 }
 0x20f   :  { %v114_v0 = vmul.f32 %v178_v61, %v105_v62 }
 0x210   :  { %v203_v1 = vpop.eup %202 }
 0x211   :  { %v123_v2 = vadd.f32 %v179_v63, %v114_v0  ;;  %v106_v3 = vmul.f32 %v203_v1, %v90_v50 }
 0x213   :  { %v125_v4 = vmul.f32 %v123_v2, %v123_v2  ;;  %v115_v5 = vmul.f32 %v178_v61, %v106_v3 }
 0x215   :  { %v127_v6 = vsel %vm33_vm0, %v125_v4, 0.0  ;;  %v124_v7 = vadd.f32 %v179_v63, %v115_v5 }
 0x216   :  { %128 = vadd.xlane.f32.xlu0 %v127_v6 }
 0x217   :  { %v126_v8 = vmul.f32 %v124_v7, %v124_v7 }
 0x219   :  { %v130_v9 = vsel %vm33_vm0, %v126_v8, 0.0 }
 0x21a   :  { %131 = vadd.xlane.f32.xlu1 %v130_v9 }
 0x2a3   :  { %v129_v10 = vpop.xlane.xlu0 %128 }
 0x2a4   :  { %204 = vrsqrt.f32 %v129_v10  ;;  %vm135_vm5 = vcmp.eq.f32.partialorder %v129_v10, inf  ;;  %v138_v14 = vand.u32 2147483648, %v129_v10  ;;  %vm137_vm6 = vcmp.eq.f32.partialorder %v129_v10, 0.0 }
 0x2a7   :  { %v132_v11 = vpop.xlane.xlu1 %131 }
 0x2a8   :  { %206 = vrsqrt.f32 %v132_v11  ;;  %vm142_vm7 = vcmp.eq.f32.partialorder %v132_v11, inf  ;;  %v145_v20 = vand.u32 2147483648, %v132_v11  ;;  %vm144_vm8 = vcmp.eq.f32.partialorder %v132_v11, 0.0 }
 0x2ae   :  { %v205_v12 = vpop.eup %204 }
 0x2af   :  { %v134_v13 = vmul.f32 %v205_v12, %v129_v10 }
 0x2b1   :  { %v136_v15 = vsel %vm135_vm5, %v129_v10, %v134_v13 }
 0x2b2   :  { %v207_v16 = vpop.eup %206  ;;  %v139_v17 = vsel %vm137_vm6, %v138_v14, %v136_v15 }
 0x2b3   :  { %v147_v18 = vmax.f32 %v139_v17, 1e-15  ;;  %v141_v19 = vmul.f32 %v207_v16, %v132_v11 }
 0x2b5   :  { %208 = vtanh.f32 %v147_v18  ;;  %v143_v21 = vsel %vm142_vm7, %v132_v11, %v141_v19 }
 0x2b6   :  { %210 = vrcp.f32 %v147_v18  ;;  %v146_v22 = vsel %vm144_vm8, %v145_v20, %v143_v21 }
 0x2b7   :  { %v148_v23 = vmax.f32 %v146_v22, 1e-15 }
 0x2b9   :  { %212 = vtanh.f32 %v148_v23 }
 0x2ba   :  { %214 = vrcp.f32 %v148_v23 }
 0x2bf   :  { %v209_v24 = vpop.eup %208 }
 0x2c0   :  { %v211_v25 = vpop.eup %210 }
 0x2c1   :  { %v152_v26 = vmul.f32 %v211_v25, %v209_v24 }
 0x2c3   :  { %v213_v27 = vpop.eup %212  ;;  %v155_v28 = vmul.f32 %v152_v26, %v123_v2 }
 0x2c4   :  { %v215_v29 = vpop.eup %214 }
 0x2c5   :  { %v154_v30 = vmul.f32 %v215_v29, %v213_v27  ;;  %157 = vst.msk [vmem:[#allocation5] sm:$0xff] %vm33_vm0, %v155_v28 }
 0x2c7   :  { %v156_v31 = vmul.f32 %v154_v30, %v124_v7 }
 0x2c9   :  { %158 = vst.msk [vmem:[#allocation5 + $0x8] sm:$0xff] %vm33_vm0, %v156_v31 }
 0x2ca   :  { %249 = shalt.err (!%p246_p12)
}
 0x2cb   :  { %s250_s5 = scalar_lea.hbm %s337_s3, 256 }
 0x2cc   :  { %p251_p13 = scmp.ne.s32.totalorder %s337_s3, %s250_s5  ;;  %p254_p0 = scmp.lt.u32.totalorder %s250_s5, %s337_s3 }
 0x2ce   :  { %p256_p1 = pnand %p254_p0, %p251_p13 }
 0x2d0   :  { %259 = shalt.err (!%p256_p1)
}
 0x2d1   :  { %170 = dma.vmem_to_hbm [thread:$0]  %s165_s2, 256, %s337_s3, [#allocation4], %s265_s22, %s265_s22, %s266_s23  }
 0x2d2   :  { %262 = dma.done.wait [#allocation4], 256  }
 0x2d3   :  { %263 = vsyncadd [#allocation4], 4294967040 }
 0x2d4   :  { %174 = vsyncpa [#allocation3], 1 }
 0x2d5   :  { %175 = vsyncpa [#allocation4], 1 }

</bundles_post_ra>
